<compile_context>
chip_gen: v7x
topology: tpu7x:2x2x1
jax: 0.10.0
libtpu: 0.0.40
codegen_flags: <defaults>
</compile_context>

<pallas_src>
import jax
import jax.numpy as jnp
from jax.experimental import pallas as pl
from jax.experimental.pallas import tpu as pltpu


def _bpr_partial_kernel(up_ref, ut_ref, ip_ref, it_ref,
                        out_u_ref, out_i_ref, acc_ref):
    s = pl.program_id(1)

    @pl.when(s == 0)
    def _():
        acc_ref[...] = jnp.zeros_like(acc_ref)

    # Cast (if needed) happens in-kernel; wrapper does NOT materialize f32
    # copies in HBM.
    du = up_ref[...].astype(jnp.float32) - ut_ref[...].astype(jnp.float32)
    di = ip_ref[...].astype(jnp.float32) - it_ref[...].astype(jnp.float32)

    # Pure-VPU elementwise accumulation; no XLU reduce in the steady state.
    acc_ref[0] += du * du
    acc_ref[1] += di * di

    @pl.when(s == pl.num_programs(1) - 1)
    def _():
        # One-time cross-sublane/lane reduce per core; the only sub-128-lane
        # store is this single scalar per output.
        out_u_ref[...] = jnp.sum(acc_ref[0], keepdims=True).reshape(1, 1, 1)
        out_i_ref[...] = jnp.sum(acc_ref[1], keepdims=True).reshape(1, 1, 1)


def _as_lane_tiles(x, total_rows):
    """Flatten to 1-D, zero-pad, and view as a lane-dense [total_rows, 128]."""
    flat = jnp.ravel(x)
    pad = total_rows * 128 - flat.size
    if pad:
        flat = jnp.pad(flat, (0, pad))
    return flat.reshape(total_rows, 128)


def bpr_loss(user_attr_p, user_attr_t, item_attr_p, item_attr_t, rating,
             *, tile_rows=512, n_split=2):
    """sqrt(mean((up-ut)^2)) + sqrt(mean((ip-it)^2)), matching _BPR_LOSS."""
    # `rating` only feeds loss3 in the PyTorch module, which never reaches the
    # returned loss (a=1, b=1); it is intentionally never read by the kernel.
    del rating

    n_user = user_attr_p.size
    n_item = item_attr_p.size
    rows = max(pl.cdiv(n_user, 128), pl.cdiv(n_item, 128))

    # Lane-dense row tile (multiple of 8 sublanes), clamped to the real amount
    # of work so tiny inputs are not padded up to a full 512-row tile.
    tile_rows = max(8, min(tile_rows, ((rows + 7) // 8) * 8))
    tile_rows = ((tile_rows + 7) // 8) * 8

    # Only split across TensorCores when there is more than one tile of work.
    if rows <= tile_rows:
        n_split = 1
    steps = pl.cdiv(rows, n_split * tile_rows)
    total_rows = n_split * steps * tile_rows

    up_p = _as_lane_tiles(user_attr_p, total_rows)
    ut_p = _as_lane_tiles(user_attr_t, total_rows)
    ip_p = _as_lane_tiles(item_attr_p, total_rows)
    it_p = _as_lane_tiles(item_attr_t, total_rows)

    def _in_spec():
        return pl.BlockSpec((tile_rows, 128),
                            lambda c, s: (c * steps + s, 0))

    def _out_spec():
        return pl.BlockSpec((1, 1, 1), lambda c, s: (c, 0, 0))

    out_u, out_i = pl.pallas_call(
        _bpr_partial_kernel,
        out_shape=(jax.ShapeDtypeStruct((n_split, 1, 1), jnp.float32),
                   jax.ShapeDtypeStruct((n_split, 1, 1), jnp.float32)),
        grid_spec=pltpu.PrefetchScalarGridSpec(
            num_scalar_prefetch=0,
            grid=(n_split, steps),
            in_specs=[_in_spec() for _ in range(4)],
            out_specs=[_out_spec(), _out_spec()],
            scratch_shapes=[pltpu.VMEM((2, tile_rows, 128), jnp.float32)],
        ),
        compiler_params=pltpu.CompilerParams(
            dimension_semantics=("parallel", "arbitrary"),
            # Explicit scoped-VMEM budget: safe on v5e/v6e (128 MiB physical)
            # and v7x (64 MiB physical); the default tile uses ~2.5 MiB.
            vmem_limit_bytes=32 * 1024 * 1024),
    )(up_p, ut_p, ip_p, it_p)

    # Per-core partial sums -> final sqrt(mean) combine (trivial scalar work).
    loss1 = jnp.sqrt(jnp.sum(out_u) / n_user)
    loss2 = jnp.sqrt(jnp.sum(out_i) / n_item)
    return 1.0 * loss1 + 1.0 * loss2


def bpr_loss_ref(up, ut, ip, it, rating):
    loss1 = jnp.sqrt(jnp.mean((up - ut) ** 2))
    loss2 = jnp.sqrt(jnp.mean((ip - it) ** 2))
    _ = jnp.sqrt(jnp.mean(rating ** 2))  # unused, as in the PyTorch module
    return loss1 + loss2


if __name__ == "__main__":
    key = jax.random.PRNGKey(0)
    k1, k2, k3, k4, k5 = jax.random.split(key, 5)

    # Small shapes matching the module's forward signature.
    B, Du, Di = 16, 32, 64
    user_attr_p = jax.random.normal(k1, (B, Du), dtype=jnp.float32)
    user_attr_t = jax.random.normal(k2, (B, Du), dtype=jnp.float32)
    item_attr_p = jax.random.normal(k3, (B, Di), dtype=jnp.float32)
    item_attr_t = jax.random.normal(k4, (B, Di), dtype=jnp.float32)
    rating = jax.random.normal(k5, (B, 1), dtype=jnp.float32)

    out = bpr_loss(user_attr_p, user_attr_t, item_attr_p, item_attr_t, rating)
    out = jax.block_until_ready(out)
    ref = bpr_loss_ref(user_attr_p, user_attr_t, item_attr_p, item_attr_t,
                       rating)
    assert jnp.allclose(out, ref, rtol=1e-5, atol=1e-5), (out, ref)

    # Second check exercising the multi-step + two-TensorCore-split path.
    B2, Du2, Di2 = 64, 256, 384
    j1, j2, j3, j4, j5 = jax.random.split(jax.random.PRNGKey(1), 5)
    up2 = jax.random.normal(j1, (B2, Du2), dtype=jnp.float32)
    ut2 = jax.random.normal(j2, (B2, Du2), dtype=jnp.float32)
    ip2 = jax.random.normal(j3, (B2, Di2), dtype=jnp.float32)
    it2 = jax.random.normal(j4, (B2, Di2), dtype=jnp.float32)
    r2 = jax.random.normal(j5, (B2, 1), dtype=jnp.float32)

    out2 = bpr_loss(up2, ut2, ip2, it2, r2, tile_rows=64)
    out2 = jax.block_until_ready(out2)
    ref2 = bpr_loss_ref(up2, ut2, ip2, it2, r2)
    assert jnp.allclose(out2, ref2, rtol=1e-5, atol=1e-5), (out2, ref2)

    print("KERNEL_OK")
</pallas_src>

<mosaic_0001>
module attributes {stable_mosaic.version = 11 : i64} {
  func.func @_bpr_partial_kernel(%arg0: i32, %arg1: i32, %arg2: memref<8x128xf32, #tpu.memory_space<vmem>>, %arg3: memref<8x128xf32, #tpu.memory_space<vmem>>, %arg4: memref<8x128xf32, #tpu.memory_space<vmem>>, %arg5: memref<8x128xf32, #tpu.memory_space<vmem>>, %arg6: memref<1x1x1xf32, #tpu.memory_space<vmem>>, %arg7: memref<1x1x1xf32, #tpu.memory_space<vmem>>, %arg8: memref<2x8x128xf32, #tpu.memory_space<vmem>>) attributes {dimension_semantics = [#tpu.dimension_semantics<parallel>, #tpu.dimension_semantics<arbitrary>], iteration_bounds = array<i64: 1, 1>, scalar_prefetch = 0 : i64, scratch_operands = 1 : i64, tpu.core_type = #tpu.core_type<tc>, window_params = [{transform_indices = @transform_0, window_bounds = array<i64: 8, 128>}, {transform_indices = @transform_1, window_bounds = array<i64: 8, 128>}, {transform_indices = @transform_2, window_bounds = array<i64: 8, 128>}, {transform_indices = @transform_3, window_bounds = array<i64: 8, 128>}, {transform_indices = @transform_4, window_bounds = array<i64: 1, 1, 1>}, {transform_indices = @transform_5, window_bounds = array<i64: 1, 1, 1>}]} {
    %c0_i32 = arith.constant 0 : i32
    %0 = arith.cmpi eq, %arg1, %c0_i32 : i32
    %1 = arith.extui %0 : i1 to i32
    %c0_i32_0 = arith.constant 0 : i32
    %2 = arith.cmpi ne, %1, %c0_i32_0 : i32
    scf.if %2 {
      %cst = arith.constant 0.000000e+00 : f32
      %26 = vector.broadcast %cst : f32 to vector<2x8x128xf32>
      %c0_21 = arith.constant 0 : index
      %c0_22 = arith.constant 0 : index
      %c0_23 = arith.constant 0 : index
      %27 = vector.load %arg8[%c0_21, %c0_22, %c0_23] : memref<2x8x128xf32, #tpu.memory_space<vmem>>, vector<2x8x128xf32>
      tpu.vector_store %arg8[%c0_21, %c0_22, %c0_23], %26 {strides = array<i32>} : memref<2x8x128xf32, #tpu.memory_space<vmem>>, vector<2x8x128xf32>,
    } else {
    }
    %c0 = arith.constant 0 : index
    %c0_1 = arith.constant 0 : index
    %3 = vector.load %arg2[%c0, %c0_1] : memref<8x128xf32, #tpu.memory_space<vmem>>, vector<8x128xf32>
    %c0_2 = arith.constant 0 : index
    %c0_3 = arith.constant 0 : index
    %4 = vector.load %arg3[%c0_2, %c0_3] : memref<8x128xf32, #tpu.memory_space<vmem>>, vector<8x128xf32>
    %5 = arith.subf %3, %4 : vector<8x128xf32>
    %c0_4 = arith.constant 0 : index
    %c0_5 = arith.constant 0 : index
    %6 = vector.load %arg4[%c0_4, %c0_5] : memref<8x128xf32, #tpu.memory_space<vmem>>, vector<8x128xf32>
    %c0_6 = arith.constant 0 : index
    %c0_7 = arith.constant 0 : index
    %7 = vector.load %arg5[%c0_6, %c0_7] : memref<8x128xf32, #tpu.memory_space<vmem>>, vector<8x128xf32>
    %8 = arith.subf %6, %7 : vector<8x128xf32>
    %c0_8 = arith.constant 0 : index
    %c0_9 = arith.constant 0 : index
    %c0_10 = arith.constant 0 : index
    %9 = vector.load %arg8[%c0_8, %c0_9, %c0_10] : memref<2x8x128xf32, #tpu.memory_space<vmem>>, vector<1x8x128xf32>
    %10 = vector.shape_cast %9 : vector<1x8x128xf32> to vector<8x128xf32>
    %11 = arith.mulf %5, %5 : vector<8x128xf32>
    %12 = arith.addf %10, %11 : vector<8x128xf32>
    %c0_11 = arith.constant 0 : index
    %c0_12 = arith.constant 0 : index
    %c0_13 = arith.constant 0 : index
    %13 = vector.load %arg8[%c0_11, %c0_12, %c0_13] : memref<2x8x128xf32, #tpu.memory_space<vmem>>, vector<1x8x128xf32>
    %14 = vector.shape_cast %13 : vector<1x8x128xf32> to vector<8x128xf32>
    %15 = vector.shape_cast %12 : vector<8x128xf32> to vector<1x8x128xf32>
    tpu.vector_store %arg8[%c0_11, %c0_12, %c0_13], %15 {strides = array<i32>} : memref<2x8x128xf32, #tpu.memory_space<vmem>>, vector<1x8x128xf32>,
    %c1 = arith.constant 1 : index
    %c0_14 = arith.constant 0 : index
    %c0_15 = arith.constant 0 : index
    %16 = vector.load %arg8[%c1, %c0_14, %c0_15] : memref<2x8x128xf32, #tpu.memory_space<vmem>>, vector<1x8x128xf32>
    %17 = vector.shape_cast %16 : vector<1x8x128xf32> to vector<8x128xf32>
    %18 = arith.mulf %8, %8 : vector<8x128xf32>
    %19 = arith.addf %17, %18 : vector<8x128xf32>
    %c1_16 = arith.constant 1 : index
    %c0_17 = arith.constant 0 : index
    %c0_18 = arith.constant 0 : index
    %20 = vector.load %arg8[%c1_16, %c0_17, %c0_18] : memref<2x8x128xf32, #tpu.memory_space<vmem>>, vector<1x8x128xf32>
    %21 = vector.shape_cast %20 : vector<1x8x128xf32> to vector<8x128xf32>
    %22 = vector.shape_cast %19 : vector<8x128xf32> to vector<1x8x128xf32>
    tpu.vector_store %arg8[%c1_16, %c0_17, %c0_18], %22 {strides = array<i32>} : memref<2x8x128xf32, #tpu.memory_space<vmem>>, vector<1x8x128xf32>,
    %c0_i32_19 = arith.constant 0 : i32
    %23 = arith.cmpi eq, %arg1, %c0_i32_19 : i32
    %24 = arith.extui %23 : i1 to i32
    %c0_i32_20 = arith.constant 0 : i32
    %25 = arith.cmpi ne, %24, %c0_i32_20 : i32
    scf.if %25 {
      %c0_21 = arith.constant 0 : index
      %c0_22 = arith.constant 0 : index
      %c0_23 = arith.constant 0 : index
      %26 = vector.load %arg8[%c0_21, %c0_22, %c0_23] : memref<2x8x128xf32, #tpu.memory_space<vmem>>, vector<1x8x128xf32>
      %27 = vector.shape_cast %26 : vector<1x8x128xf32> to vector<8x128xf32>
      %28 = vector.shape_cast %27 : vector<8x128xf32> to vector<1x8x128xf32>
      %cst = arith.constant dense<0.000000e+00> : vector<1xf32>
      %29 = vector.multi_reduction <add>, %28, %cst [1, 2] : vector<1x8x128xf32> to vector<1xf32>
      %30 = vector.shape_cast %29 : vector<1xf32> to vector<1x1x1xf32>
      %31 = vector.extract %30[0, 0, 0] : f32 from vector<1x1x1xf32>
      %32 = vector.broadcast %31 : f32 to vector<1x1xf32>
      %33 = vector.shape_cast %32 : vector<1x1xf32> to vector<1x1x1xf32>
      %c0_24 = arith.constant 0 : index
      %c0_25 = arith.constant 0 : index
      %c0_26 = arith.constant 0 : index
      %34 = vector.load %arg6[%c0_24, %c0_25, %c0_26] : memref<1x1x1xf32, #tpu.memory_space<vmem>>, vector<1x1x1xf32>
      tpu.vector_store %arg6[%c0_24, %c0_25, %c0_26], %33 {strides = array<i32>} : memref<1x1x1xf32, #tpu.memory_space<vmem>>, vector<1x1x1xf32>,
      %c1_27 = arith.constant 1 : index
      %c0_28 = arith.constant 0 : index
      %c0_29 = arith.constant 0 : index
      %35 = vector.load %arg8[%c1_27, %c0_28, %c0_29] : memref<2x8x128xf32, #tpu.memory_space<vmem>>, vector<1x8x128xf32>
      %36 = vector.shape_cast %35 : vector<1x8x128xf32> to vector<8x128xf32>
      %37 = vector.shape_cast %36 : vector<8x128xf32> to vector<1x8x128xf32>
      %cst_30 = arith.constant dense<0.000000e+00> : vector<1xf32>
      %38 = vector.multi_reduction <add>, %37, %cst_30 [1, 2] : vector<1x8x128xf32> to vector<1xf32>
      %39 = vector.shape_cast %38 : vector<1xf32> to vector<1x1x1xf32>
      %40 = vector.extract %39[0, 0, 0] : f32 from vector<1x1x1xf32>
      %41 = vector.broadcast %40 : f32 to vector<1x1xf32>
      %42 = vector.shape_cast %41 : vector<1x1xf32> to vector<1x1x1xf32>
      %c0_31 = arith.constant 0 : index
      %c0_32 = arith.constant 0 : index
      %c0_33 = arith.constant 0 : index
      %43 = vector.load %arg7[%c0_31, %c0_32, %c0_33] : memref<1x1x1xf32, #tpu.memory_space<vmem>>, vector<1x1x1xf32>
      tpu.vector_store %arg7[%c0_31, %c0_32, %c0_33], %42 {strides = array<i32>} : memref<1x1x1xf32, #tpu.memory_space<vmem>>, vector<1x1x1xf32>,
    } else {
    }
    return
  }
  func.func @transform_0(%arg0: i32, %arg1: i32) -> (i32, i32) {
    %c1_i32 = arith.constant 1 : i32
    %0 = arith.muli %arg0, %c1_i32 : i32
    %1 = arith.addi %0, %arg1 : i32
    %c0_i32 = arith.constant 0 : i32
    %c0_i32_0 = arith.constant 0 : i32
    return %1, %c0_i32 : i32, i32
  }
  func.func @transform_1(%arg0: i32, %arg1: i32) -> (i32, i32) {
    %c1_i32 = arith.constant 1 : i32
    %0 = arith.muli %arg0, %c1_i32 : i32
    %1 = arith.addi %0, %arg1 : i32
    %c0_i32 = arith.constant 0 : i32
    %c0_i32_0 = arith.constant 0 : i32
    return %1, %c0_i32 : i32, i32
  }
  func.func @transform_2(%arg0: i32, %arg1: i32) -> (i32, i32) {
    %c1_i32 = arith.constant 1 : i32
    %0 = arith.muli %arg0, %c1_i32 : i32
    %1 = arith.addi %0, %arg1 : i32
    %c0_i32 = arith.constant 0 : i32
    %c0_i32_0 = arith.constant 0 : i32
    return %1, %c0_i32 : i32, i32
  }
  func.func @transform_3(%arg0: i32, %arg1: i32) -> (i32, i32) {
    %c1_i32 = arith.constant 1 : i32
    %0 = arith.muli %arg0, %c1_i32 : i32
    %1 = arith.addi %0, %arg1 : i32
    %c0_i32 = arith.constant 0 : i32
    %c0_i32_0 = arith.constant 0 : i32
    return %1, %c0_i32 : i32, i32
  }
  func.func @transform_4(%arg0: i32, %arg1: i32) -> (i32, i32, i32) {
    %c0_i32 = arith.constant 0 : i32
    %c0_i32_0 = arith.constant 0 : i32
    %c0_i32_1 = arith.constant 0 : i32
    return %arg0, %c0_i32, %c0_i32_0 : i32, i32, i32
  }
  func.func @transform_5(%arg0: i32, %arg1: i32) -> (i32, i32, i32) {
    %c0_i32 = arith.constant 0 : i32
    %c0_i32_0 = arith.constant 0 : i32
    %c0_i32_1 = arith.constant 0 : i32
    return %arg0, %c0_i32, %c0_i32_0 : i32, i32, i32
  }
}

</mosaic_0001>

<bundles_post_ra>
// kernel: tpu_custom_call.1
= control target key start
LH: loop header
LB: loop body
LE: loop exit
PB: predicated region body
PF: predicated region fallthrough
CT: control target
= control target key end

     0   :  { %11 = vsyncpa [#allocation4], 0  ;;  %s397_s0 = inlined_call_operand.hbm [shape: f32[8,128], index: 0, kind: input, shape index: {}]   ;;  %s398_s1 = inlined_call_operand.hbm [shape: f32[8,128], index: 1, kind: input, shape index: {}]   ;;  %s399_s2 = inlined_call_operand.hbm [shape: f32[8,128], index: 2, kind: input, shape index: {}]   ;;  %s400_s3 = inlined_call_operand.vmem [shape: f32[8,128], index: 3, kind: input, shape index: {}]   ;;  %s401_s4 = inlined_call_operand.hbm [shape: f32[1,1,1], index: 4, kind: output, shape index: {0}]   ;;  %s402_s5 = inlined_call_operand.hbm [shape: f32[1,1,1], index: 5, kind: output, shape index: {1}]  }
   0x1   :  { %12 = vsyncpa [#allocation7], 0 }
   0x2   :  { %13 = vsyncpa [#allocation5], 0 }
   0x3   :  { %14 = vsyncpa [#allocation11], 0  ;;  %s297_s18 = smov [#allocation6]   ;;  %s298_s20 = smov [#allocation3]  }
   0x4   :  { %s37_s19 = sshll.u32 %s297_s18, 4  ;;  %s24_s21 = sshll.u32 %s298_s20, 4  ;;  %s38_s19 = int_to_ptr.vmem [resolvable:$true] %s37_s19  ;;  %s25_s21 = int_to_ptr.vmem [resolvable:$true] %s24_s21 }
   0x5   :  { %s179_s24 = scalar_lea.hbm %s398_s1, 128 }
   0x6   :  { %p180_p0 = scmp.ne.s32.totalorder %s398_s1, %s179_s24  ;;  %p183_p1 = scmp.lt.u32.totalorder %s179_s24, %s398_s1 }
   0x8   :  { %p185_p2 = pnand %p183_p1, %p180_p0 }
   0xa   :  { %188 = shalt.err (!%p185_p2)
}
   0xb   :  { %s189_s29 = scalar_lea.vmem %s38_s19, 128  ;;  %p194_p4 = scmp.lt.s32.totalorder %s38_s19, %s38_s19 }
   0xc   :  { %p190_p3 = scmp.ne.s32.totalorder %s38_s19, %s189_s29  ;;  %p195_p5 = scmp.lt.s32.totalorder %s189_s29, %s189_s29 }
   0xe   :  { %p196_p6 = por %p195_p5, %p194_p4 }
  0x10   :  { %p197_p7 = pnand %p196_p6, %p190_p3 }
  0x12   :  { %200 = shalt.err (!%p197_p7)
}
  0x13   :  { %40 = dma.hbm_to_vmem [thread:$0]  %s398_s1, 128, %s38_s19, [#allocation7]  }
  0x14   :  { %s201_s9 = scalar_lea.hbm %s397_s0, 128 }
  0x15   :  { %p202_p8 = scmp.ne.s32.totalorder %s397_s0, %s201_s9  ;;  %p205_p9 = scmp.lt.u32.totalorder %s201_s9, %s397_s0 }
  0x17   :  { %p207_p10 = pnand %p205_p9, %p202_p8 }
  0x19   :  { %210 = shalt.err (!%p207_p10)
}
  0x1a   :  { %s211_s14 = scalar_lea.vmem %s25_s21, 128  ;;  %p216_p12 = scmp.lt.s32.totalorder %s25_s21, %s25_s21 }
  0x1b   :  { %p212_p11 = scmp.ne.s32.totalorder %s25_s21, %s211_s14  ;;  %p217_p13 = scmp.lt.s32.totalorder %s211_s14, %s211_s14 }
  0x1d   :  { %p218_p0 = por %p217_p13, %p216_p12 }
  0x1f   :  { %p219_p1 = pnand %p218_p0, %p212_p11 }
  0x21   :  { %222 = shalt.err (!%p219_p1)
}
  0x22   :  { %27 = dma.hbm_to_vmem [thread:$0]  %s397_s0, 128, %s25_s21, [#allocation4]  }
  0x23   :  { %s299_s16 = smov [#allocation8]   ;;  %s223_s20 = scalar_lea.hbm %s399_s2, 128 }
  0x24   :  { %s50_s17 = sshll.u32 %s299_s16, 4  ;;  %p224_p2 = scmp.ne.s32.totalorder %s399_s2, %s223_s20  ;;  %s51_s17 = int_to_ptr.vmem [resolvable:$true] %s50_s17 }
  0x25   :  { %p227_p3 = scmp.lt.u32.totalorder %s223_s20, %s399_s2 }
  0x27   :  { %p229_p4 = pnand %p227_p3, %p224_p2 }
  0x29   :  { %232 = shalt.err (!%p229_p4)
}
  0x2a   :  { %s233_s26 = scalar_lea.vmem %s51_s17, 128  ;;  %p238_p6 = scmp.lt.s32.totalorder %s51_s17, %s51_s17 }
  0x2b   :  { %p234_p5 = scmp.ne.s32.totalorder %s51_s17, %s233_s26  ;;  %p239_p7 = scmp.lt.s32.totalorder %s233_s26, %s233_s26 }
  0x2d   :  { %p240_p8 = por %p239_p7, %p238_p6 }
  0x2f   :  { %p241_p9 = pnand %p240_p8, %p234_p5 }
  0x31   :  { %244 = shalt.err (!%p241_p9)
}
  0x32   :  { %53 = dma.hbm_to_vmem [thread:$0]  %s399_s2, 128, %s51_s17, [#allocation7]  }
  0x33   :  { %289 = dma.done.wait [#allocation4], 128  }
  0x34   :  { %290 = vsyncadd [#allocation4], 4294967168 }
  0x35   :  { %291 = dma.done.wait [#allocation7], 256  }
  0x36   :  { %292 = vsyncadd [#allocation7], 4294967040  ;;  %v91_v0 = vld [vmem:[#allocation3] sm:$0xff]  ;;  %v92_v1 = vld [vmem:[#allocation6] sm:$0xff]  ;;  %s300_s2 = smov [#allocation9]   ;;  %vm120_vm0 = vcmask 0  }
  0x37   :  { %v94_v2 = vld [vmem:[#allocation8] sm:$0xff]  ;;  %v93_v3 = vsub.f32 %v91_v0, %v92_v1  ;;  %v95_v4 = vld [vmem:[%s400_s3] sm:$0xff]  ;;  %s140_s3 = sshll.u32 %s300_s2, 4  ;;  %s301_s30 = smov [#allocation10]   ;;  %s141_s3 = int_to_ptr.vmem [resolvable:$true] %s140_s3 }
  0x38   :  { %v96_v5 = vsub.f32 %v94_v2, %v95_v4  ;;  %s150_s6 = sshll.u32 %s301_s30, 4  ;;  %s245_s7 = scalar_lea.vmem %s141_s3, 16  ;;  %s151_s6 = int_to_ptr.vmem [resolvable:$true] %s150_s6 }
  0x39   :  { %v98_v6 = vmul.f32 %v93_v3, %v93_v3  ;;  %p246_p10 = scmp.ne.s32.totalorder %s141_s3, %s245_s7  ;;  %s249_s8 = scalar_lea.vmem %s141_s3, 32 }
  0x3a   :  { %v103_v7 = vmul.f32 %v96_v5, %v96_v5  ;;  %p250_p11 = scmp.lt.s32.totalorder %s141_s3, %s141_s3  ;;  %p251_p12 = scmp.lt.s32.totalorder %s249_s8, %s245_s7 }
  0x3b   :  { %110 = vadd.xlane.f32.xlu0 %v98_v6 }
  0x3c   :  { %p252_p13 = por %p251_p12, %p250_p11 }
  0x3e   :  { %p253_p0 = pnand %p252_p13, %p246_p10 }
  0x3f   :  { %123 = vadd.xlane.f32.xlu0 %v103_v7 }
  0xc8   :  { %v111_v8 = vpop.xlane.xlu0 %110 }
  0xc9   :  { %v112_v9 = vrot.slane %v111_v8, 4 }
  0xcb   :  { %v113_v10 = vadd.f32 %v112_v9, %v111_v8 }
  0xcc   :  { %v124_v11 = vpop.xlane.xlu0 %123 }
  0xcd   :  { %v114_v12 = vrot.slane %v113_v10, 2  ;;  %v125_v13 = vrot.slane %v124_v11, 4 }
  0xcf   :  { %v126_v14 = vadd.f32 %v125_v13, %v124_v11  ;;  %v115_v15 = vadd.f32 %v114_v12, %v113_v10 }
  0xd1   :  { %v127_v16 = vrot.slane %v126_v14, 2  ;;  %v116_v17 = vrot.slane %v115_v15, 1 }
  0xd3   :  { %v128_v18 = vadd.f32 %v127_v16, %v126_v14  ;;  %v117_v19 = vadd.f32 %v116_v17, %v115_v15 }
  0xd5   :  { %170 = vpush %v117_v19  ;;  %v129_v20 = vrot.slane %v128_v18, 1 }
  0xd7   :  { %v130_v21 = vadd.f32 %v129_v20, %v128_v18 }
  0xd9   :  { %172 = vpush %v130_v21 }
 0x106   :  { %s171_s29 = spop %170 }
 0x107   :  { %v119_v22 = vstv %s171_s29 }
 0x108   :  { %121 = vst.msk [vmem:[#allocation9] sm:$0x1] %vm120_vm0, %v119_v22 }
 0x109   :  { %256 = shalt.err (!%p253_p0)
}
 0x10a   :  { %s257_s11 = scalar_lea.hbm %s401_s4, 16 }
 0x10b   :  { %p258_p1 = scmp.ne.s32.totalorder %s401_s4, %s257_s11  ;;  %p261_p2 = scmp.lt.u32.totalorder %s257_s11, %s401_s4 }
 0x10d   :  { %p263_p3 = pnand %p261_p2, %p258_p1 }
 0x10f   :  { %266 = shalt.err (!%p263_p3)
}
 0x110   :  { %143 = dma.vmem_to_hbm [thread:$0]  %s141_s3, 16, %s401_s4, [#allocation5]  }
 0x111   :  { %s173_s17 = spop %172  ;;  %s267_s18 = scalar_lea.vmem %s151_s6, 16 }
 0x112   :  { %v132_v23 = vstv %s173_s17  ;;  %p268_p4 = scmp.ne.s32.totalorder %s151_s6, %s267_s18  ;;  %s271_s19 = scalar_lea.vmem %s151_s6, 32 }
 0x113   :  { %133 = vst.msk [vmem:[#allocation10] sm:$0x1] %vm120_vm0, %v132_v23  ;;  %p272_p5 = scmp.lt.s32.totalorder %s151_s6, %s151_s6  ;;  %p273_p6 = scmp.lt.s32.totalorder %s271_s19, %s267_s18 }
 0x115   :  { %p274_p7 = por %p273_p6, %p272_p5 }
 0x117   :  { %p275_p8 = pnand %p274_p7, %p268_p4 }
 0x119   :  { %278 = shalt.err (!%p275_p8)
}
 0x11a   :  { %s279_s23 = scalar_lea.hbm %s402_s5, 16 }
 0x11b   :  { %p280_p9 = scmp.ne.s32.totalorder %s402_s5, %s279_s23  ;;  %p283_p10 = scmp.lt.u32.totalorder %s279_s23, %s402_s5 }
 0x11d   :  { %p285_p11 = pnand %p283_p10, %p280_p9 }
 0x11f   :  { %288 = shalt.err (!%p285_p11)
}
 0x120   :  { %153 = dma.vmem_to_hbm [thread:$0]  %s151_s6, 16, %s402_s5, [#allocation11]  }
 0x121   :  { %293 = dma.done.wait [#allocation5], 16  }
 0x122   :  { %294 = vsyncadd [#allocation5], 4294967280 }
 0x123   :  { %295 = dma.done.wait [#allocation11], 16  }
 0x124   :  { %296 = vsyncadd [#allocation11], 4294967280 }
 0x125   :  { %160 = vsyncpa [#allocation4], 1 }
 0x126   :  { %161 = vsyncpa [#allocation7], 1 }
 0x127   :  { %162 = vsyncpa [#allocation5], 1 }
 0x128   :  { %163 = vsyncpa [#allocation11], 1 }

</bundles_post_ra>
